<compile_context>
chip_gen: v7x
topology: tpu7x:2x2x1
jax: 0.10.0
libtpu: 0.0.40
codegen_flags: <defaults>
</compile_context>

<pallas_src>
import jax
import jax.numpy as jnp
from jax.experimental import pallas as pl
from jax.experimental.pallas import tpu as pltpu


def _round_up(x, m):
    return (x + m - 1) // m * m


def tabular_encoder_kernel(
    x_ref,                  # [B_blk, D_in]   combined (numerical ++ embeddings)
    wa1_ref, ba1_ref,       # attention Linear 1: [D_in, D_a], [1, D_a]
    wa2_ref, ba2_ref,       # attention Linear 2: [D_a, D_in], [1, D_in]
    w1_ref, b1_ref,         # mlp Linear 1 (BN folded): [D_in, H1], [1, H1]
    w2_ref, b2_ref,         # mlp Linear 2 (BN folded): [H1, H2], [1, H2]
    w3_ref, b3_ref,         # output Linear (lane-padded): [H2, D_out_pad], [1, D_out_pad]
    o_ref,                  # [B_blk, D_out_pad]
):
    x = x_ref[...]

    # feature_attention: sigmoid(relu(x @ Wa1 + ba1) @ Wa2 + ba2)
    a = jnp.dot(x, wa1_ref[...], preferred_element_type=jnp.float32) + ba1_ref[...]
    a = jnp.maximum(a, 0.0)
    a = jnp.dot(a, wa2_ref[...], preferred_element_type=jnp.float32) + ba2_ref[...]
    attn = jax.nn.sigmoid(a)

    # attended_features = combined_features * attention_weights
    h = x * attn

    # mlp block 1: Linear (BatchNorm folded in) -> ReLU -> Dropout(identity)
    h = jnp.dot(h, w1_ref[...], preferred_element_type=jnp.float32) + b1_ref[...]
    h = jnp.maximum(h, 0.0)

    # mlp block 2
    h = jnp.dot(h, w2_ref[...], preferred_element_type=jnp.float32) + b2_ref[...]
    h = jnp.maximum(h, 0.0)

    # final Linear -> lane-dense padded output
    o_ref[...] = (
        jnp.dot(h, w3_ref[...], preferred_element_type=jnp.float32) + b3_ref[...]
    ).astype(o_ref.dtype)


def _resident_spec(shape):
    # Full-array block with a constant index_map: DMA'd once, VMEM-resident
    # across all batch-grid steps.
    return pl.BlockSpec(shape, lambda i: (0,) * len(shape))


def tabular_encoder_forward(combined, params, *, block_b=1024):
    """combined: [B, D_in] float32 (numerical features ++ embedded categoricals)."""
    B, D_in = combined.shape

    # --- wrapper-side param prep (zero runtime cost inside the kernel) ------
    # Fold eval-mode BatchNorm scale/shift into the preceding Linear.
    w1 = params["w1"] * params["s1"]
    b1 = params["b1"] * params["s1"] + params["t1"]
    w2 = params["w2"] * params["s2"]
    b2 = params["b2"] * params["s2"] + params["t2"]

    # Lane-dense output: pad output feature dim to a multiple of 128 so stores
    # are unmasked; padded columns are exactly zero and sliced off afterwards.
    D_out = params["w3"].shape[1]
    D_out_pad = _round_up(D_out, 128)
    w3 = jnp.pad(params["w3"], ((0, 0), (0, D_out_pad - D_out)))
    b3 = jnp.pad(params["b3"], ((0, 0), (0, D_out_pad - D_out)))

    # --- batch tiling -------------------------------------------------------
    # Largest row block up to `block_b` (multiple of 8 sublanes); pad the batch
    # so the grid divides evenly, slice the padding off at the end.
    B_blk = min(block_b, _round_up(B, 8))
    B_pad = _round_up(B, B_blk)
    x = combined if B_pad == B else jnp.pad(combined, ((0, B_pad - B), (0, 0)))

    weights = (
        params["wa1"], params["ba1"], params["wa2"], params["ba2"],
        w1, b1, w2, b2, w3, b3,
    )
    in_specs = [pl.BlockSpec((B_blk, D_in), lambda i: (i, 0))]
    in_specs += [_resident_spec(w.shape) for w in weights]

    # NOTE: at B_blk=1024 the pipelined x/out tiles + all weights are << the
    # default scoped VMEM limit on every generation (v5e 16 MiB / v6e 32 MiB /
    # v7x 32 MiB), so vmem_limit_bytes is left at its default. Raise it if
    # block_b is pushed much larger.
    out = pl.pallas_call(
        tabular_encoder_kernel,
        out_shape=jax.ShapeDtypeStruct((B_pad, D_out_pad), jnp.float32),
        grid=(B_pad // B_blk,),
        in_specs=in_specs,
        out_specs=pl.BlockSpec((B_blk, D_out_pad), lambda i: (i, 0)),
        compiler_params=pltpu.CompilerParams(
            dimension_semantics=("parallel",),   # megacore sharding on v7x
        ),
    )(x, *weights)

    return out[:B, :D_out]


def _linear_init(key, fan_in, fan_out):
    # torch nn.Linear default: U(-1/sqrt(fan_in), 1/sqrt(fan_in))
    kw, kb = jax.random.split(key)
    bound = 1.0 / jnp.sqrt(jnp.float32(fan_in))
    w = jax.random.uniform(kw, (fan_in, fan_out), jnp.float32, -bound, bound)
    b = jax.random.uniform(kb, (1, fan_out), jnp.float32, -bound, bound)
    return w, b


def _fold_batchnorm(gamma, beta, running_mean, running_var, eps=1e-5):
    scale = gamma / jnp.sqrt(running_var + eps)
    shift = beta - running_mean * scale
    return scale.reshape(1, -1), shift.reshape(1, -1)


def init_params(key, num_numerical, categorical_features, embedding_dims,
                hidden_dims, output_dim):
    input_dim = num_numerical + sum(
        embedding_dims[f]["embed_dim"]
        for f in categorical_features if f in embedding_dims
    )
    d_a = input_dim // 2
    keys = jax.random.split(key, 8 + len(categorical_features))
    ki = iter(keys)
    params = {}

    # nn.Embedding default init: N(0, 1)
    for feat in categorical_features:
        if feat in embedding_dims:
            cfg = embedding_dims[feat]
            params[f"emb_{feat}"] = jax.random.normal(
                next(ki), (cfg["vocab_size"], cfg["embed_dim"]), jnp.float32)

    # feature_attention
    params["wa1"], params["ba1"] = _linear_init(next(ki), input_dim, d_a)
    params["wa2"], params["ba2"] = _linear_init(next(ki), d_a, input_dim)

    # mlp
    h1, h2 = hidden_dims
    params["w1"], params["b1"] = _linear_init(next(ki), input_dim, h1)
    params["w2"], params["b2"] = _linear_init(next(ki), h1, h2)
    params["w3"], params["b3"] = _linear_init(next(ki), h2, output_dim)

    # BatchNorm1d (eval mode, default-initialized stats) -> per-feature
    # scale/shift; folded into the Linear weights inside the wrapper.
    for name, dim in (("1", h1), ("2", h2)):
        gamma = jnp.ones((dim,), jnp.float32)
        beta = jnp.zeros((dim,), jnp.float32)
        rmean = jnp.zeros((dim,), jnp.float32)
        rvar = jnp.ones((dim,), jnp.float32)
        params[f"s{name}"], params[f"t{name}"] = _fold_batchnorm(gamma, beta, rmean, rvar)

    return params, input_dim


if __name__ == "__main__":
    key = jax.random.PRNGKey(0)

    # Module configuration (small, consistent with the constructor).
    numerical_features = ["n0", "n1", "n2", "n3"]                 # 4 numericals
    categorical_features = ["cat_a", "cat_b"]
    embedding_dims = {
        "cat_a": {"vocab_size": 11, "embed_dim": 6},
        "cat_b": {"vocab_size": 7,  "embed_dim": 6},
    }
    hidden_dims = [64, 32]
    output_dim = 64
    batch = 8

    k_params, k_num, k_ca, k_cb = jax.random.split(key, 4)
    params, input_dim = init_params(
        k_params, len(numerical_features), categorical_features,
        embedding_dims, hidden_dims, output_dim)

    # Inputs
    numerical_data = jax.random.normal(
        k_num, (batch, len(numerical_features)), jnp.float32)
    categorical_data = {
        "cat_a": jax.random.randint(k_ca, (batch,), 0, 11),
        "cat_b": jax.random.randint(k_cb, (batch,), 0, 7),
    }

    # Embedding lookup + concat (glue, plain JAX gather).
    features = [numerical_data]
    for feat in categorical_features:
        features.append(params[f"emb_{feat}"][categorical_data[feat]])
    combined = jnp.concatenate(features, axis=-1)          # [batch, input_dim]
    assert combined.shape == (batch, input_dim)

    # TODO(synk): Dropout is identity (eval mode); BatchNorm1d uses running
    # stats (eval mode) folded into the Linear weights — training-mode batch
    # statistics are not reproduced.
    out = tabular_encoder_forward(combined, params)
    jax.block_until_ready(out)
    assert out.shape == (batch, output_dim)
    print("KERNEL_OK")
</pallas_src>

<mosaic_0001>
module attributes {stable_mosaic.version = 11 : i64} {
  func.func @tabular_encoder_kernel(%arg0: i32, %arg1: memref<8x16xf32, #tpu.memory_space<vmem>>, %arg2: memref<16x8xf32, #tpu.memory_space<vmem>>, %arg3: memref<1x8xf32, #tpu.memory_space<vmem>>, %arg4: memref<8x16xf32, #tpu.memory_space<vmem>>, %arg5: memref<1x16xf32, #tpu.memory_space<vmem>>, %arg6: memref<16x64xf32, #tpu.memory_space<vmem>>, %arg7: memref<1x64xf32, #tpu.memory_space<vmem>>, %arg8: memref<64x32xf32, #tpu.memory_space<vmem>>, %arg9: memref<1x32xf32, #tpu.memory_space<vmem>>, %arg10: memref<32x128xf32, #tpu.memory_space<vmem>>, %arg11: memref<1x128xf32, #tpu.memory_space<vmem>>, %arg12: memref<8x128xf32, #tpu.memory_space<vmem>>) attributes {dimension_semantics = [#tpu.dimension_semantics<parallel>], iteration_bounds = array<i64: 1>, scalar_prefetch = 0 : i64, scratch_operands = 0 : i64, tpu.core_type = #tpu.core_type<tc>, window_params = [{transform_indices = @transform_0, window_bounds = array<i64: 8, 16>}, {pipeline_mode = #tpu.pipeline_mode<synchronous>, transform_indices = @transform_1, window_bounds = array<i64: 16, 8>}, {pipeline_mode = #tpu.pipeline_mode<synchronous>, transform_indices = @transform_2, window_bounds = array<i64: 1, 8>}, {pipeline_mode = #tpu.pipeline_mode<synchronous>, transform_indices = @transform_3, window_bounds = array<i64: 8, 16>}, {pipeline_mode = #tpu.pipeline_mode<synchronous>, transform_indices = @transform_4, window_bounds = array<i64: 1, 16>}, {pipeline_mode = #tpu.pipeline_mode<synchronous>, transform_indices = @transform_5, window_bounds = array<i64: 16, 64>}, {pipeline_mode = #tpu.pipeline_mode<synchronous>, transform_indices = @transform_6, window_bounds = array<i64: 1, 64>}, {pipeline_mode = #tpu.pipeline_mode<synchronous>, transform_indices = @transform_7, window_bounds = array<i64: 64, 32>}, {pipeline_mode = #tpu.pipeline_mode<synchronous>, transform_indices = @transform_8, window_bounds = array<i64: 1, 32>}, {pipeline_mode = #tpu.pipeline_mode<synchronous>, transform_indices = @transform_9, window_bounds = array<i64: 32, 128>}, {pipeline_mode = #tpu.pipeline_mode<synchronous>, transform_indices = @transform_10, window_bounds = array<i64: 1, 128>}, {transform_indices = @transform_11, window_bounds = array<i64: 8, 128>}]} {
    %c0 = arith.constant 0 : index
    %c0_0 = arith.constant 0 : index
    %0 = vector.load %arg1[%c0, %c0_0] : memref<8x16xf32, #tpu.memory_space<vmem>>, vector<8x16xf32>
    %c0_1 = arith.constant 0 : index
    %c0_2 = arith.constant 0 : index
    %1 = vector.load %arg2[%c0_1, %c0_2] : memref<16x8xf32, #tpu.memory_space<vmem>>, vector<16x8xf32>
    %cst = arith.constant dense<0.000000e+00> : vector<8x8xf32>
    %2 = tpu.matmul %0, %1, %cst {dimension_numbers = #tpu.dot_dimension_numbers<[1], [0], [0], [1], [0, 0, 1, 1], [], []>} : vector<8x16xf32>, vector<16x8xf32>, vector<8x8xf32> -> vector<8x8xf32>
    %c0_3 = arith.constant 0 : index
    %c0_4 = arith.constant 0 : index
    %3 = vector.load %arg3[%c0_3, %c0_4] : memref<1x8xf32, #tpu.memory_space<vmem>>, vector<1x8xf32>
    %4 = vector.broadcast %3 : vector<1x8xf32> to vector<8x8xf32>
    %5 = arith.addf %2, %4 : vector<8x8xf32>
    %cst_5 = arith.constant 0.000000e+00 : f32
    %6 = vector.broadcast %cst_5 : f32 to vector<8x8xf32>
    %7 = arith.maximumf %5, %6 : vector<8x8xf32>
    %c0_6 = arith.constant 0 : index
    %c0_7 = arith.constant 0 : index
    %8 = vector.load %arg4[%c0_6, %c0_7] : memref<8x16xf32, #tpu.memory_space<vmem>>, vector<8x16xf32>
    %cst_8 = arith.constant dense<0.000000e+00> : vector<8x16xf32>
    %9 = tpu.matmul %7, %8, %cst_8 {dimension_numbers = #tpu.dot_dimension_numbers<[1], [0], [0], [1], [0, 0, 1, 1], [], []>} : vector<8x8xf32>, vector<8x16xf32>, vector<8x16xf32> -> vector<8x16xf32>
    %c0_9 = arith.constant 0 : index
    %c0_10 = arith.constant 0 : index
    %10 = vector.load %arg5[%c0_9, %c0_10] : memref<1x16xf32, #tpu.memory_space<vmem>>, vector<1x16xf32>
    %11 = vector.broadcast %10 : vector<1x16xf32> to vector<8x16xf32>
    %12 = arith.addf %9, %11 : vector<8x16xf32>
    %13 = arith.negf %12 : vector<8x16xf32>
    %14 = math.exp %13 : vector<8x16xf32>
    %cst_11 = arith.constant 1.000000e+00 : f32
    %15 = vector.broadcast %cst_11 : f32 to vector<8x16xf32>
    %16 = arith.addf %15, %14 : vector<8x16xf32>
    %17 = arith.divf %15, %16 : vector<8x16xf32>
    %18 = arith.mulf %0, %17 : vector<8x16xf32>
    %c0_12 = arith.constant 0 : index
    %c0_13 = arith.constant 0 : index
    %19 = vector.load %arg6[%c0_12, %c0_13] : memref<16x64xf32, #tpu.memory_space<vmem>>, vector<16x64xf32>
    %cst_14 = arith.constant dense<0.000000e+00> : vector<8x64xf32>
    %20 = tpu.matmul %18, %19, %cst_14 {dimension_numbers = #tpu.dot_dimension_numbers<[1], [0], [0], [1], [0, 0, 1, 1], [], []>} : vector<8x16xf32>, vector<16x64xf32>, vector<8x64xf32> -> vector<8x64xf32>
    %c0_15 = arith.constant 0 : index
    %c0_16 = arith.constant 0 : index
    %21 = vector.load %arg7[%c0_15, %c0_16] : memref<1x64xf32, #tpu.memory_space<vmem>>, vector<1x64xf32>
    %22 = vector.broadcast %21 : vector<1x64xf32> to vector<8x64xf32>
    %23 = arith.addf %20, %22 : vector<8x64xf32>
    %cst_17 = arith.constant 0.000000e+00 : f32
    %24 = vector.broadcast %cst_17 : f32 to vector<8x64xf32>
    %25 = arith.maximumf %23, %24 : vector<8x64xf32>
    %c0_18 = arith.constant 0 : index
    %c0_19 = arith.constant 0 : index
    %26 = vector.load %arg8[%c0_18, %c0_19] : memref<64x32xf32, #tpu.memory_space<vmem>>, vector<64x32xf32>
    %cst_20 = arith.constant dense<0.000000e+00> : vector<8x32xf32>
    %27 = tpu.matmul %25, %26, %cst_20 {dimension_numbers = #tpu.dot_dimension_numbers<[1], [0], [0], [1], [0, 0, 1, 1], [], []>} : vector<8x64xf32>, vector<64x32xf32>, vector<8x32xf32> -> vector<8x32xf32>
    %c0_21 = arith.constant 0 : index
    %c0_22 = arith.constant 0 : index
    %28 = vector.load %arg9[%c0_21, %c0_22] : memref<1x32xf32, #tpu.memory_space<vmem>>, vector<1x32xf32>
    %29 = vector.broadcast %28 : vector<1x32xf32> to vector<8x32xf32>
    %30 = arith.addf %27, %29 : vector<8x32xf32>
    %cst_23 = arith.constant 0.000000e+00 : f32
    %31 = vector.broadcast %cst_23 : f32 to vector<8x32xf32>
    %32 = arith.maximumf %30, %31 : vector<8x32xf32>
    %c0_24 = arith.constant 0 : index
    %c0_25 = arith.constant 0 : index
    %33 = vector.load %arg10[%c0_24, %c0_25] : memref<32x128xf32, #tpu.memory_space<vmem>>, vector<32x128xf32>
    %cst_26 = arith.constant dense<0.000000e+00> : vector<8x128xf32>
    %34 = tpu.matmul %32, %33, %cst_26 {dimension_numbers = #tpu.dot_dimension_numbers<[1], [0], [0], [1], [0, 0, 1, 1], [], []>} : vector<8x32xf32>, vector<32x128xf32>, vector<8x128xf32> -> vector<8x128xf32>
    %c0_27 = arith.constant 0 : index
    %c0_28 = arith.constant 0 : index
    %35 = vector.load %arg11[%c0_27, %c0_28] : memref<1x128xf32, #tpu.memory_space<vmem>>, vector<1x128xf32>
    %36 = vector.broadcast %35 : vector<1x128xf32> to vector<8x128xf32>
    %37 = arith.addf %34, %36 : vector<8x128xf32>
    %c0_29 = arith.constant 0 : index
    %c0_30 = arith.constant 0 : index
    %38 = vector.load %arg12[%c0_29, %c0_30] : memref<8x128xf32, #tpu.memory_space<vmem>>, vector<8x128xf32>
    tpu.vector_store %arg12[%c0_29, %c0_30], %37 {strides = array<i32>} : memref<8x128xf32, #tpu.memory_space<vmem>>, vector<8x128xf32>,
    return
  }
  func.func @transform_0(%arg0: i32) -> (i32, i32) {
    %c0_i32 = arith.constant 0 : i32
    %c0_i32_0 = arith.constant 0 : i32
    return %arg0, %c0_i32 : i32, i32
  }
  func.func @transform_1(%arg0: i32) -> (i32, i32) {
    %c0_i32 = arith.constant 0 : i32
    %c0_i32_0 = arith.constant 0 : i32
    %c0_i32_1 = arith.constant 0 : i32
    return %c0_i32, %c0_i32_0 : i32, i32
  }
  func.func @transform_2(%arg0: i32) -> (i32, i32) {
    %c0_i32 = arith.constant 0 : i32
    %c0_i32_0 = arith.constant 0 : i32
    %c0_i32_1 = arith.constant 0 : i32
    return %c0_i32, %c0_i32_0 : i32, i32
  }
  func.func @transform_3(%arg0: i32) -> (i32, i32) {
    %c0_i32 = arith.constant 0 : i32
    %c0_i32_0 = arith.constant 0 : i32
    %c0_i32_1 = arith.constant 0 : i32
    return %c0_i32, %c0_i32_0 : i32, i32
  }
  func.func @transform_4(%arg0: i32) -> (i32, i32) {
    %c0_i32 = arith.constant 0 : i32
    %c0_i32_0 = arith.constant 0 : i32
    %c0_i32_1 = arith.constant 0 : i32
    return %c0_i32, %c0_i32_0 : i32, i32
  }
  func.func @transform_5(%arg0: i32) -> (i32, i32) {
    %c0_i32 = arith.constant 0 : i32
    %c0_i32_0 = arith.constant 0 : i32
    %c0_i32_1 = arith.constant 0 : i32
    return %c0_i32, %c0_i32_0 : i32, i32
  }
  func.func @transform_6(%arg0: i32) -> (i32, i32) {
    %c0_i32 = arith.constant 0 : i32
    %c0_i32_0 = arith.constant 0 : i32
    %c0_i32_1 = arith.constant 0 : i32
    return %c0_i32, %c0_i32_0 : i32, i32
  }
  func.func @transform_7(%arg0: i32) -> (i32, i32) {
    %c0_i32 = arith.constant 0 : i32
    %c0_i32_0 = arith.constant 0 : i32
    %c0_i32_1 = arith.constant 0 : i32
    return %c0_i32, %c0_i32_0 : i32, i32
  }
  func.func @transform_8(%arg0: i32) -> (i32, i32) {
    %c0_i32 = arith.constant 0 : i32
    %c0_i32_0 = arith.constant 0 : i32
    %c0_i32_1 = arith.constant 0 : i32
    return %c0_i32, %c0_i32_0 : i32, i32
  }
  func.func @transform_9(%arg0: i32) -> (i32, i32) {
    %c0_i32 = arith.constant 0 : i32
    %c0_i32_0 = arith.constant 0 : i32
    %c0_i32_1 = arith.constant 0 : i32
    return %c0_i32, %c0_i32_0 : i32, i32
  }
  func.func @transform_10(%arg0: i32) -> (i32, i32) {
    %c0_i32 = arith.constant 0 : i32
    %c0_i32_0 = arith.constant 0 : i32
    %c0_i32_1 = arith.constant 0 : i32
    return %c0_i32, %c0_i32_0 : i32, i32
  }
  func.func @transform_11(%arg0: i32) -> (i32, i32) {
    %c0_i32 = arith.constant 0 : i32
    %c0_i32_0 = arith.constant 0 : i32
    return %arg0, %c0_i32 : i32, i32
  }
}

</mosaic_0001>

<bundles_post_ra>
// kernel: tpu_custom_call.1
= control target key start
LH: loop header
LB: loop body
LE: loop exit
PB: predicated region body
PF: predicated region fallthrough
CT: control target
= control target key end

     0   :  { %v624_v2 = vmov 0.0|0.0   ;;  %vm625_vm0 = vmmov 0   ;;  %v626_v4 = vmov 0.0   ;;  %s784_s0 = inlined_call_operand.vmem [shape: f32[8,16], index: 0, kind: input, shape index: {}]   ;;  %s785_s1 = inlined_call_operand.vmem [shape: f32[16,8], index: 1, kind: input, shape index: {}]   ;;  %s786_s2 = inlined_call_operand.vmem [shape: f32[1,8], index: 2, kind: input, shape index: {}]   ;;  %s787_s3 = inlined_call_operand.vmem [shape: f32[8,16], index: 3, kind: input, shape index: {}]   ;;  %s788_s4 = inlined_call_operand.vmem [shape: f32[1,16], index: 4, kind: input, shape index: {}]   ;;  %s789_s5 = inlined_call_operand.vmem [shape: f32[16,64], index: 5, kind: input, shape index: {}]   ;;  %s790_s6 = inlined_call_operand.vmem [shape: f32[1,64], index: 6, kind: input, shape index: {}]   ;;  %s791_s7 = inlined_call_operand.vmem [shape: f32[64,32], index: 7, kind: input, shape index: {}]   ;;  %s792_s8 = inlined_call_operand.vmem [shape: f32[1,32], index: 8, kind: input, shape index: {}]   ;;  %s793_s9 = inlined_call_operand.vmem [shape: f32[32,128], index: 9, kind: input, shape index: {}]   ;;  %s794_s10 = inlined_call_operand.vmem [shape: f32[1,128], index: 10, kind: input, shape index: {}]   ;;  %s795_s11 = inlined_call_operand.hbm [shape: f32[8,128], index: 11, kind: output, shape index: {}]  }
   0x1   :  { %v40_v0 = vld [vmem:[%s785_s1] sm:$0xff]  ;;  %v41_v1 = vld [vmem:[%s785_s1 + $0x8] sm:$0xff]  ;;  %568 = vmatprep.subr.bf16.mxu0 %v624_v2  ;;  %523 = vmatprep.mubr.msk.f32.mxu0 %vm625_vm0, %v626_v4 }
   0x2   :  { %v569_v3 = vpack.c.bf16 %v41_v1, %v40_v0 }
   0x3   :  { %16 = vsyncpa [#allocation3], 0  ;;  %526 = vmatprep.subr.mxu1 %v626_v4  ;;  %528 = vmatprep.mubr.msk.f32.mxu1 %vm625_vm0, %v626_v4  ;;  %v39_v5 = vld [vmem:[%s784_s0] sm:$0xff]  ;;  %vm49_vm1 = vcmask 130048   ;;  %vm132_vm2 = vcmask 64512   ;;  %v214_v13 = vld [vmem:[%s789_s5 + $0x8] sm:$0xff] }
   0x4   :  { %570 = vmatpush3.bf16.msra.mxu0 %v569_v3  ;;  %v124_v6 = vld [vmem:[%s787_s3] sm:$0xff]  ;;  %v297_v16 = vld [vmem:[%s791_s7 + $0x8] sm:$0xff]  ;;  %v298_v17 = vld [vmem:[%s791_s7 + $0x10] sm:$0xff]  ;;  %vm311_vm3 = vcmask 523264   ;;  %vm397_vm4 = vcmask 261120   ;;  %s627_s13 = smov [#allocation2]  }
   0x5   :  { %574 = vmatprep.subr.bf16.mxu0 %v624_v2  ;;  %527 = vmatpush3.msra.mxu1 %v124_v6  ;;  %v486_v7 = vld [vmem:[%s786_s2] ss:$0 sm:$0xff]  ;;  %v299_v19 = vld [vmem:[%s791_s7 + $0x18] sm:$0xff]  ;;  %v301_v22 = vld [vmem:[%s791_s7 + $0x28] sm:$0xff]  ;;  %s478_s14 = sshll.u32 %s627_s13, 4  ;;  %s479_s14 = int_to_ptr.vmem [resolvable:$true] %s478_s14 }
   0x6   :  { %571 = vmatprep.subr.bf16.mxu1 %v624_v2  ;;  %v213_v12 = vld [vmem:[%s789_s5] sm:$0xff]  ;;  %v578_v20 = vpack.c.bf16 %v299_v19, %v298_v17  ;;  %v302_v33 = vld [vmem:[%s791_s7 + $0x30] sm:$0xff]  ;;  %v303_v34 = vld [vmem:[%s791_s7 + $0x38] sm:$0xff]  ;;  %p605_p1 = scmp.lt.s32.totalorder %s479_s14, %s479_s14 }
   0x7   :  { %524 = vmatmul.mubr.msk.f32.vlgmr.msra.gmra.mrb[0].mxu0 %vm49_vm1, %v39_v5  ;;  %v572_v14 = vpack.c.bf16 %v214_v13, %v213_v12  ;;  %v296_v15 = vld [vmem:[%s791_s7] sm:$0xff]  ;;  %v584_v35 = vpack.c.bf16 %v303_v34, %v302_v33  ;;  %v387_v37 = vld [vmem:[%s793_s9 + $0x8] sm:$0xff]  ;;  %v388_v44 = vld [vmem:[%s793_s9 + $0x10] sm:$0xff] }
   0x8   :  { %554 = vmatprep.mubr.msk.f32.mxu0 %vm625_vm0, %v626_v4  ;;  %v575_v18 = vpack.c.bf16 %v297_v16, %v296_v15  ;;  %v300_v21 = vld [vmem:[%s791_s7 + $0x20] sm:$0xff]  ;;  %v389_v45 = vld [vmem:[%s793_s9 + $0x18] sm:$0xff] }
   0x9   :  { %v581_v23 = vpack.c.bf16 %v301_v22, %v300_v21  ;;  %v488_v24 = vld [vmem:[%s788_s4] ss:$0 sm:$0xff]  ;;  %v590_v46 = vpack.c.bf16 %v389_v45, %v388_v44 }
   0xa   :  { %576 = vmatpush3.bf16.msra.mxu0 %v575_v18  ;;  %v386_v36 = vld [vmem:[%s793_s9] sm:$0xff]  ;;  %s600_s9 = scalar_lea.vmem %s479_s14, 128 }
   0xb   :  { %577 = vmatprep.subr.bf16.mxu0 %v624_v2  ;;  %v587_v38 = vpack.c.bf16 %v387_v37, %v386_v36  ;;  %v491_v39 = vld [vmem:[%s790_s6] ss:$0 sm:$0xff]  ;;  %p601_p0 = scmp.ne.s32.totalorder %s479_s14, %s600_s9  ;;  %p606_p2 = scmp.lt.s32.totalorder %s600_s9, %s600_s9 }
   0xc   :  { %v493_v47 = vld [vmem:[%s792_s8] ss:$0 sm:$0xff] }
   0xd   :  { %v495_v52 = vld [vmem:[%s794_s10] ss:$0 sm:$0xff]  ;;  %p607_p3 = por %p606_p2, %p605_p1 }
   0xe   :  { %579 = vmatpush3.bf16.msra.mxu0 %v578_v20 }
   0xf   :  { %580 = vmatprep.subr.bf16.mxu0 %v624_v2  ;;  %p608_p4 = pnand %p607_p3, %p601_p0 }
  0x12   :  { %582 = vmatpush3.bf16.msra.mxu0 %v581_v23 }
  0x13   :  { %583 = vmatprep.subr.bf16.mxu0 %v624_v2 }
  0x16   :  { %585 = vmatpush3.bf16.msra.mxu0 %v584_v35 }
  0xda   :  { %v119_v8 = vpop.f32.mrb[0].mxu0 }
  0xdb   :  { %v120_v9 = vadd.f32 %v486_v7, %v119_v8  ;;  %v525_v10 = vpop.f32.mrb[1].mxu0 }
  0xdd   :  { %v123_v11 = vmax.f32 %v120_v9, 0.0 }
  0xdf   :  { %529 = vmatmul.mubr.msk.f32.vlgmr.msra.gmra.mrb[0].mxu1 %vm132_vm2, %v123_v11 }
  0xe0   :  { %535 = vmatprep.mubr.msk.f32.mxu1 %vm625_vm0, %v626_v4  ;;  %573 = vmatpush3.bf16.msra.mxu1 %v572_v14 }
  0xe1   :  { %586 = vmatprep.subr.bf16.mxu1 %v624_v2 }
 0x1b2   :  { %v202_v25 = vpop.f32.mrb[0].mxu1 }
 0x1b3   :  { %v203_v26 = vadd.f32 %v488_v24, %v202_v25  ;;  %v530_v27 = vpop.f32.mrb[1].mxu1 }
 0x1b5   :  { %v490_v28 = vmul.f32 -1.442695, %v203_v26 }
 0x1b7   :  { %596 = vpow2.f32 %v490_v28 }
 0x1c1   :  { %v597_v29 = vpop.eup %596 }
 0x1c2   :  { %v209_v30 = vadd.f32 1.0, %v597_v29 }
 0x1c4   :  { %598 = vrcp.f32 %v209_v30 }
 0x1ce   :  { %v599_v31 = vpop.eup %598 }
 0x1cf   :  { %v212_v32 = vmul.f32 %v599_v31, %v39_v5 }
 0x1d1   :  { %536 = vmatmul.mubr.msk.f32.vlgmr.msra.gmra.mrb[2].mxu1 %vm49_vm1, %v212_v32 }
 0x1d2   :  { %565 = vmatprep.mubr.msk.f32.mxu1 %vm625_vm0, %v626_v4  ;;  %588 = vmatpush3.bf16.msra.mxu1 %v587_v38 }
 0x1d3   :  { %589 = vmatprep.subr.bf16.mxu1 %v624_v2 }
 0x1d6   :  { %591 = vmatpush3.bf16.msra.mxu1 %v590_v46 }
 0x2a4   :  { %v291_v40 = vpop.f32.mrb[2].mxu1 }
 0x2a5   :  { %v292_v41 = vadd.f32 %v491_v39, %v291_v40  ;;  %v537_v42 = vpop.f32.mrb[3].mxu1 }
 0x2a7   :  { %v295_v43 = vmax.f32 %v292_v41, 0.0 }
 0x2a9   :  { %555 = vmatmul.mubr.msk.f32.vlgmr.msra.gmra.mrb[2].mxu0 %vm311_vm3, %v295_v43 }
 0x37c   :  { %v381_v48 = vpop.f32.mrb[2].mxu0 }
 0x37d   :  { %v382_v49 = vadd.f32 %v493_v47, %v381_v48  ;;  %v556_v50 = vpop.f32.mrb[3].mxu0 }
 0x37f   :  { %v385_v51 = vmax.f32 %v382_v49, 0.0 }
 0x381   :  { %566 = vmatmul.mubr.msk.f32.vlgmr.msra.gmra.mrb[4].mxu1 %vm397_vm4, %v385_v51 }
 0x454   :  { %v467_v53 = vpop.f32.mrb[4].mxu1 }
 0x455   :  { %v468_v54 = vadd.f32 %v495_v52, %v467_v53  ;;  %v567_v55 = vpop.f32.mrb[5].mxu1 }
 0x457   :  { %471 = vst [vmem:[#allocation2] sm:$0xff] %v468_v54 }
 0x458   :  { %611 = shalt.err (!%p608_p4)
}
 0x459   :  { %s612_s5 = scalar_lea.hbm %s795_s11, 128 }
 0x45a   :  { %p613_p5 = scmp.ne.s32.totalorder %s795_s11, %s612_s5  ;;  %p616_p6 = scmp.lt.u32.totalorder %s612_s5, %s795_s11 }
 0x45c   :  { %p618_p7 = pnand %p616_p6, %p613_p5 }
 0x45e   :  { %621 = shalt.err (!%p618_p7)
}
 0x45f   :  { %481 = dma.vmem_to_hbm [thread:$0]  %s479_s14, 128, %s795_s11, [#allocation3]  }
 0x460   :  { %622 = dma.done.wait [#allocation3], 128  }
 0x461   :  { %623 = vsyncadd [#allocation3], 4294967168 }
 0x462   :  { %485 = vsyncpa [#allocation3], 1 }

</bundles_post_ra>
